<compile_context>
chip_gen: v5e
topology: v5e:2x2
jax: 0.10.0
libtpu: 0.0.40
codegen_flags: <defaults>
</compile_context>

<pallas_src>
import functools

import jax
import jax.numpy as jnp
from jax import lax
from jax.experimental import pallas as pl
from jax.experimental.pallas import tpu as pltpu


_BLOCK_BUDGET_BYTES = 8 * 1024 * 1024    # logical (in + out) bytes per grid step
_VMEM_CAP_BYTES = 48 * 1024 * 1024       # leave headroom on v7x's 64 MiB / TC
_MIN_GRID_STEPS = 8                      # soft target so both v7x TCs get work


def _sublane_granule(dtype):
    """Minimum channel-tile granularity for the second-minor block dim."""
    return max(8, 32 // jnp.dtype(dtype).itemsize)


# ---------------------------------------------------------------------------
# Flat path: 'same' padding with H_out == H, W_out == W (the D2SR config).
# ---------------------------------------------------------------------------
def _patches_flat_kernel(*refs, kh, kw, pad_h, pad_w, H, W, T, use_halo):
    """out[:, i*kw+j, p] = x_flat[base + p + (i-pad_h)*W + (j-pad_w)] (masked).

    Refs (halo):    col(1,T), cur(c,T), prev(c,T), next(c,T), out(c,kh*kw,T)
    Refs (no halo): col(1,T), cur(c,T),                       out(c,kh*kw,T)
    """
    if use_halo:
        col_ref, cur_ref, prev_ref, next_ref, out_ref = refs
    else:
        col_ref, cur_ref, out_ref = refs

    base = pl.program_id(2) * T                      # absolute flat tile offset
    pos = lax.broadcasted_iota(jnp.int32, (1, T), 1)
    col = col_ref[...]                               # (base + pos) % W, host-side

    # Row validity, one (1, T) mask per kernel row i (no vector integer div):
    #   0 <= row(q) + dh < H  <=>  q >= -dh*W  and  q < (H - dh)*W,  q = base+pos
    row_ok = []
    for i in range(kh):
        dh = i - pad_h
        row_ok.append((pos >= (-dh * W - base)) & (pos < ((H - dh) * W - base)))
    # Column validity, one (1, T) mask per kernel column j.
    col_ok = []
    for j in range(kw):
        dw = j - pad_w
        col_ok.append((col >= -dw) & (col < W - dw))

    cur = cur_ref[...]
    if use_halo:
        prv = prev_ref[...]
        nxt = next_ref[...]

    for i in range(kh):
        for j in range(kw):
            s = (i - pad_h) * W + (j - pad_w)        # flat source shift of this tap
            shift = (-s) % T
            rolled_cur = pltpu.roll(cur, shift=shift, axis=1) if shift else cur
            if (not use_halo) or s == 0:
                # Single tile: any wrap-around is masked by row/col validity.
                src = rolled_cur
            elif s > 0:
                # Positions past the tile end come from the next tile.
                src = jnp.where(pos < T - s, rolled_cur,
                                pltpu.roll(nxt, shift=shift, axis=1))
            else:
                # Positions before the tile start come from the previous tile.
                src = jnp.where(pos >= -s, rolled_cur,
                                pltpu.roll(prv, shift=shift, axis=1))
            res = jnp.where(row_ok[i] & col_ok[j], src, 0)
            out_ref[:, i * kw + j, :] = res.astype(out_ref.dtype)


def _select_flat_tiles(B, C, HW, itemsize, n_taps, granule, min_halo_t):
    """Pick (c_tile, T): channel tile and flat-HW tile for the flat path."""
    c_cands = {C}
    c = granule
    while c < C:
        if C % c == 0:
            c_cands.add(c)
        c += granule

    t_cands = {HW}
    t = 128
    while t < HW:
        if t >= min_halo_t:
            t_cands.add(t)
        t *= 2

    def block_bytes(ct, tt):
        n_in = 3 if tt < HW else 1
        return ct * tt * itemsize * (n_in + n_taps) + tt * 4   # + col_ids tile

    best_key, best = None, None
    for ct in sorted(c_cands):
        for tt in sorted(t_cands):
            bb = block_bytes(ct, tt)
            steps = B * (C // ct) * (-(-HW // tt))
            no_halo = tt >= HW
            if bb <= _BLOCK_BUDGET_BYTES:
                # Fits: prefer enough grid steps, then the halo-free form
                # (fewer redundant reads), then the biggest block.
                key = (1, min(steps, _MIN_GRID_STEPS), int(no_halo), bb)
            else:
                # Nothing-fits fallback: smallest block wins (the old code
                # wrongly kept a possibly huge tile here).
                key = (0, -bb, 0, 0)
            if best_key is None or key > best_key:
                best_key, best = key, (ct, tt)
    return best


def _flat_path(x, kh, kw, pad_h, pad_w):
    B, C, H, W = x.shape
    HW = H * W
    n_taps = kh * kw
    itemsize = x.dtype.itemsize
    granule = _sublane_granule(x.dtype)

    halo_l = pad_h * W + pad_w                          # farthest backward tap
    halo_r = (kh - 1 - pad_h) * W + (kw - 1 - pad_w)    # farthest forward tap
    c_tile, T = _select_flat_tiles(B, C, HW, itemsize, n_taps, granule,
                                   max(halo_l, halo_r))
    nH = -(-HW // T)                                    # cdiv; last tile may be partial
    use_halo = nH > 1 and (halo_l > 0 or halo_r > 0)
    n_in = 3 if use_halo else 1

    block_bytes = c_tile * T * itemsize * (n_in + n_taps) + T * 4
    vmem_limit = int(min(_VMEM_CAP_BYTES,
                         max(32 * 1024 * 1024, 4 * block_bytes)))

    x3 = x.reshape(B, C, HW)                            # contiguous view, free
    # Column index of every flat position, padded to a whole number of tiles so
    # this operand's blocks never cross the array end.
    col_ids = (jnp.arange(nH * T, dtype=jnp.int32) % W).reshape(1, nH * T)

    kernel = functools.partial(
        _patches_flat_kernel, kh=kh, kw=kw, pad_h=pad_h, pad_w=pad_w,
        H=H, W=W, T=T, use_halo=use_halo)

    in_specs = [
        pl.BlockSpec((1, T), lambda b, c, h: (0, h)),                 # col ids
        pl.BlockSpec((None, c_tile, T), lambda b, c, h: (b, c, h)),   # current tile
    ]
    args = [col_ids, x3]
    if use_halo:
        in_specs += [
            pl.BlockSpec((None, c_tile, T),
                         lambda b, c, h: (b, c, jnp.maximum(h - 1, 0))),
            pl.BlockSpec((None, c_tile, T),
                         lambda b, c, h: (b, c, jnp.minimum(h + 1, nH - 1))),
        ]
        args += [x3, x3]

    out4 = pl.pallas_call(
        kernel,
        out_shape=jax.ShapeDtypeStruct((B, C, n_taps, HW), x.dtype),
        grid_spec=pltpu.PrefetchScalarGridSpec(
            num_scalar_prefetch=0,
            grid=(B, C // c_tile, nH),
            in_specs=in_specs,
            out_specs=pl.BlockSpec((None, c_tile, n_taps, T),
                                   lambda b, c, h: (b, c, 0, h)),
        ),
        compiler_params=pltpu.CompilerParams(
            dimension_semantics=("parallel", "parallel", "parallel"),
            vmem_limit_bytes=vmem_limit,
        ),
        cost_estimate=pl.CostEstimate(
            flops=0, transcendentals=0,
            bytes_accessed=int(x.size * itemsize * (n_in + n_taps))),
    )(*args)
    # (B, C, kh*kw, H*W) -> (B, C*kh*kw, H, W): contiguous reshape, free.
    return out4.reshape(B, C * n_taps, H, W)


# ---------------------------------------------------------------------------
# General path: even kernels / 'valid' padding (H_out != H or W_out != W).
# ---------------------------------------------------------------------------
def _patches_2d_kernel(xp_ref, out_ref, *, kh, kw, h_out, w_out):
    xp = xp_ref[...]                 # (c_tile, H_pad, W_pad)
    for i in range(kh):
        for j in range(kw):
            out_ref[:, i * kw + j, :, :] = xp[:, i:i + h_out, j:j + w_out]


def _pick_c_tile(C, per_channel_bytes, budget_bytes, granule):
    cands = {C}
    c = granule
    while c < C:
        if C % c == 0:
            cands.add(c)
        c += granule
    fitting = [c for c in cands if c * per_channel_bytes <= budget_bytes]
    if fitting:
        return max(fitting)
    # Nothing fits: return the smallest expressible tile (may exceed budget).
    return min(cands)


def _general_path(x, kh, kw, pad_h, pad_w):
    # TODO(synk): fuse the padding into the kernel, add spatial (H) tiling and
    # a lane-dense flat output layout here too; this path is not exercised by
    # the 3x3 'same' configuration D2SR uses.
    B, C, H, W = x.shape
    H_pad, W_pad = H + 2 * pad_h, W + 2 * pad_w
    H_out, W_out = H_pad - kh + 1, W_pad - kw + 1
    itemsize = x.dtype.itemsize
    granule = _sublane_granule(x.dtype)
    xp = jnp.pad(x, ((0, 0), (0, 0), (pad_h, pad_h), (pad_w, pad_w)))

    per_chan = (H_pad * W_pad + kh * kw * H_out * W_out) * itemsize
    c_tile = _pick_c_tile(C, per_chan, _BLOCK_BUDGET_BYTES, granule)
    vmem_limit = int(min(_VMEM_CAP_BYTES,
                         max(32 * 1024 * 1024, 4 * c_tile * per_chan)))

    kernel = functools.partial(_patches_2d_kernel, kh=kh, kw=kw,
                               h_out=H_out, w_out=W_out)
    out = pl.pallas_call(
        kernel,
        out_shape=jax.ShapeDtypeStruct((B, C, kh * kw, H_out, W_out), x.dtype),
        grid_spec=pltpu.PrefetchScalarGridSpec(
            num_scalar_prefetch=0,
            grid=(B, C // c_tile),
            in_specs=[pl.BlockSpec((None, c_tile, H_pad, W_pad),
                                   lambda b, c: (b, c, 0, 0))],
            out_specs=pl.BlockSpec((None, c_tile, kh * kw, H_out, W_out),
                                   lambda b, c: (b, c, 0, 0, 0)),
        ),
        compiler_params=pltpu.CompilerParams(
            dimension_semantics=("parallel", "parallel"),
            vmem_limit_bytes=vmem_limit,
        ),
        cost_estimate=pl.CostEstimate(
            flops=0, transcendentals=0,
            bytes_accessed=int(xp.size * itemsize
                               + B * C * kh * kw * H_out * W_out * itemsize)),
    )(xp)
    return out.reshape(B, C * kh * kw, H_out, W_out)


# ---------------------------------------------------------------------------
# Public entry point + pure-JAX reference.
# ---------------------------------------------------------------------------
def extract_split_stack_image_patches(x, kh, kw, padding="same"):
    """Pallas TPU implementation of ExtractSplitStackImagePatches.forward."""
    B, C, H, W = x.shape
    if padding == "same":
        pad_w = (kw - 1) // 2
        pad_h = (kh - 1) // 2
    else:
        pad_w = 0
        pad_h = 0
    H_out = H + 2 * pad_h - kh + 1
    W_out = W + 2 * pad_w - kw + 1
    if H_out == H and W_out == W:
        return _flat_path(x, kh, kw, pad_h, pad_w)
    return _general_path(x, kh, kw, pad_h, pad_w)


def _reference(x, kh, kw, padding="same"):
    # Pure-JAX reference mirroring the PyTorch unfold/permute/view semantics.
    B, C, H, W = x.shape
    pad_w = (kw - 1) // 2 if padding == "same" else 0
    pad_h = (kh - 1) // 2 if padding == "same" else 0
    xp = jnp.pad(x, ((0, 0), (0, 0), (pad_h, pad_h), (pad_w, pad_w)))
    H_out = H + 2 * pad_h - kh + 1
    W_out = W + 2 * pad_w - kw + 1
    planes = []
    for i in range(kh):
        for j in range(kw):
            planes.append(xp[:, :, i:i + H_out, j:j + W_out])
    stacked = jnp.stack(planes, axis=0).transpose(1, 2, 0, 3, 4)
    return stacked.reshape(B, C * kh * kw, H_out, W_out)


if __name__ == "__main__":
    key = jax.random.PRNGKey(0)
    configs = [
        # (shape, kh, kw, padding, dtype)
        ((2, 4, 16, 16), 3, 3, "same", jnp.float32),   # D2SR config: flat path, HW-tiled + halo
        ((1, 8, 12, 24), 3, 3, "same", jnp.float32),   # HW not a tile multiple (partial last block)
        ((1, 4, 16, 16), 3, 3, "same", jnp.bfloat16),  # sub-32-bit dtype
        ((2, 3, 8, 8), 2, 2, "same", jnp.float32),     # even kernel -> general path
    ]
    for idx, (shape, kh, kw, padding, dtype) in enumerate(configs):
        key, sub = jax.random.split(key)
        x = jax.random.normal(sub, shape, dtype=jnp.float32).astype(dtype)
        out = extract_split_stack_image_patches(x, kh, kw, padding=padding)
        out = jax.block_until_ready(out)
        ref = _reference(x, kh, kw, padding=padding)
        assert out.shape == ref.shape, (idx, out.shape, ref.shape)
        assert jnp.allclose(out, ref), f"mismatch vs reference for config {idx}"
    print("KERNEL_OK")
</pallas_src>

<mosaic_0001>
module attributes {stable_mosaic.version = 11 : i64} {
  func.func @_patches_flat_kernel(%arg0: i32, %arg1: i32, %arg2: i32, %arg3: memref<1x128xi32, #tpu.memory_space<vmem>>, %arg4: memref<1x4x128xf32, #tpu.memory_space<vmem>>, %arg5: memref<1x4x128xf32, #tpu.memory_space<vmem>>, %arg6: memref<1x4x128xf32, #tpu.memory_space<vmem>>, %arg7: memref<1x4x9x128xf32, #tpu.memory_space<vmem>>) attributes {dimension_semantics = [#tpu.dimension_semantics<parallel>, #tpu.dimension_semantics<parallel>, #tpu.dimension_semantics<parallel>], iteration_bounds = array<i64: 2, 1, 2>, scalar_prefetch = 0 : i64, scratch_operands = 0 : i64, tpu.core_type = #tpu.core_type<tc>, window_params = [{transform_indices = @transform_0, window_bounds = array<i64: 1, 128>}, {transform_indices = @transform_1, window_bounds = array<i64: 1, 4, 128>}, {transform_indices = @transform_2, window_bounds = array<i64: 1, 4, 128>}, {transform_indices = @transform_3, window_bounds = array<i64: 1, 4, 128>}, {transform_indices = @transform_4, window_bounds = array<i64: 1, 4, 9, 128>}]} {
    %c128_i32 = arith.constant 128 : i32
    %0 = arith.muli %arg2, %c128_i32 : i32
    %1 = tpu.iota {dimensions = array<i32: 1>} : vector<1x128xi32>
    %c0 = arith.constant 0 : index
    %c0_0 = arith.constant 0 : index
    %2 = vector.load %arg3[%c0, %c0_0] : memref<1x128xi32, #tpu.memory_space<vmem>>, vector<1x128xi32>
    %c16_i32 = arith.constant 16 : i32
    %3 = arith.subi %c16_i32, %0 : i32
    %4 = vector.broadcast %3 : i32 to vector<1x128xi32>
    %5 = arith.cmpi sge, %1, %4 : vector<1x128xi32>
    %c272_i32 = arith.constant 272 : i32
    %6 = arith.subi %c272_i32, %0 : i32
    %7 = vector.broadcast %6 : i32 to vector<1x128xi32>
    %8 = arith.cmpi slt, %1, %7 : vector<1x128xi32>
    %9 = arith.andi %5, %8 : vector<1x128xi1>
    %c0_i32 = arith.constant 0 : i32
    %10 = arith.subi %c0_i32, %0 : i32
    %11 = vector.broadcast %10 : i32 to vector<1x128xi32>
    %12 = arith.cmpi sge, %1, %11 : vector<1x128xi32>
    %c256_i32 = arith.constant 256 : i32
    %13 = arith.subi %c256_i32, %0 : i32
    %14 = vector.broadcast %13 : i32 to vector<1x128xi32>
    %15 = arith.cmpi slt, %1, %14 : vector<1x128xi32>
    %16 = arith.andi %12, %15 : vector<1x128xi1>
    %c-16_i32 = arith.constant -16 : i32
    %17 = arith.subi %c-16_i32, %0 : i32
    %18 = vector.broadcast %17 : i32 to vector<1x128xi32>
    %19 = arith.cmpi sge, %1, %18 : vector<1x128xi32>
    %c240_i32 = arith.constant 240 : i32
    %20 = arith.subi %c240_i32, %0 : i32
    %21 = vector.broadcast %20 : i32 to vector<1x128xi32>
    %22 = arith.cmpi slt, %1, %21 : vector<1x128xi32>
    %23 = arith.andi %19, %22 : vector<1x128xi1>
    %c1_i32 = arith.constant 1 : i32
    %24 = vector.broadcast %c1_i32 : i32 to vector<1x128xi32>
    %25 = arith.cmpi sge, %2, %24 : vector<1x128xi32>
    %c17_i32 = arith.constant 17 : i32
    %26 = vector.broadcast %c17_i32 : i32 to vector<1x128xi32>
    %27 = arith.cmpi slt, %2, %26 : vector<1x128xi32>
    %28 = arith.andi %25, %27 : vector<1x128xi1>
    %c0_i32_1 = arith.constant 0 : i32
    %29 = vector.broadcast %c0_i32_1 : i32 to vector<1x128xi32>
    %30 = arith.cmpi sge, %2, %29 : vector<1x128xi32>
    %c16_i32_2 = arith.constant 16 : i32
    %31 = vector.broadcast %c16_i32_2 : i32 to vector<1x128xi32>
    %32 = arith.cmpi slt, %2, %31 : vector<1x128xi32>
    %33 = arith.andi %30, %32 : vector<1x128xi1>
    %c-1_i32 = arith.constant -1 : i32
    %34 = vector.broadcast %c-1_i32 : i32 to vector<1x128xi32>
    %35 = arith.cmpi sge, %2, %34 : vector<1x128xi32>
    %c15_i32 = arith.constant 15 : i32
    %36 = vector.broadcast %c15_i32 : i32 to vector<1x128xi32>
    %37 = arith.cmpi slt, %2, %36 : vector<1x128xi32>
    %38 = arith.andi %35, %37 : vector<1x128xi1>
    %c0_3 = arith.constant 0 : index
    %c0_4 = arith.constant 0 : index
    %c0_5 = arith.constant 0 : index
    %39 = vector.load %arg4[%c0_3, %c0_4, %c0_5] : memref<1x4x128xf32, #tpu.memory_space<vmem>>, vector<1x4x128xf32>
    %40 = vector.shape_cast %39 : vector<1x4x128xf32> to vector<4x128xf32>
    %c0_6 = arith.constant 0 : index
    %c0_7 = arith.constant 0 : index
    %c0_8 = arith.constant 0 : index
    %41 = vector.load %arg5[%c0_6, %c0_7, %c0_8] : memref<1x4x128xf32, #tpu.memory_space<vmem>>, vector<1x4x128xf32>
    %42 = vector.shape_cast %41 : vector<1x4x128xf32> to vector<4x128xf32>
    %c0_9 = arith.constant 0 : index
    %c0_10 = arith.constant 0 : index
    %c0_11 = arith.constant 0 : index
    %43 = vector.load %arg6[%c0_9, %c0_10, %c0_11] : memref<1x4x128xf32, #tpu.memory_space<vmem>>, vector<1x4x128xf32>
    %44 = vector.shape_cast %43 : vector<1x4x128xf32> to vector<4x128xf32>
    %c17_i32_12 = arith.constant 17 : i32
    %45 = tpu.dynamic_rotate %40 by %c17_i32_12 dim 1 : vector<4x128xf32>, i32 -> vector<4x128xf32>
    %c17_i32_13 = arith.constant 17 : i32
    %46 = vector.broadcast %c17_i32_13 : i32 to vector<1x128xi32>
    %47 = arith.cmpi sge, %1, %46 : vector<1x128xi32>
    %c17_i32_14 = arith.constant 17 : i32
    %48 = tpu.dynamic_rotate %42 by %c17_i32_14 dim 1 : vector<4x128xf32>, i32 -> vector<4x128xf32>
    %49 = vector.shape_cast %47 : vector<1x128xi1> to vector<1x128xi1>
    %50 = vector.broadcast %49 : vector<1x128xi1> to vector<4x128xi1>
    %51 = arith.select %50, %45, %48 : vector<4x128xi1>, vector<4x128xf32>
    %52 = arith.andi %9, %28 : vector<1x128xi1>
    %c0_i32_15 = arith.constant 0 : i32
    %53 = arith.sitofp %c0_i32_15 : i32 to f32
    %54 = vector.shape_cast %52 : vector<1x128xi1> to vector<1x128xi1>
    %55 = vector.broadcast %54 : vector<1x128xi1> to vector<4x128xi1>
    %56 = vector.broadcast %53 : f32 to vector<4x128xf32>
    %57 = arith.select %55, %51, %56 : vector<4x128xi1>, vector<4x128xf32>
    %c0_16 = arith.constant 0 : index
    %c0_17 = arith.constant 0 : index
    %c0_18 = arith.constant 0 : index
    %c0_19 = arith.constant 0 : index
    %58 = vector.load %arg7[%c0_16, %c0_17, %c0_18, %c0_19] : memref<1x4x9x128xf32, #tpu.memory_space<vmem>>, vector<1x4x1x128xf32>
    %59 = vector.shape_cast %58 : vector<1x4x1x128xf32> to vector<4x128xf32>
    %60 = vector.shape_cast %57 : vector<4x128xf32> to vector<1x4x1x128xf32>
    tpu.vector_store %arg7[%c0_16, %c0_17, %c0_18, %c0_19], %60 {strides = array<i32>} : memref<1x4x9x128xf32, #tpu.memory_space<vmem>>, vector<1x4x1x128xf32>,
    %c16_i32_20 = arith.constant 16 : i32
    %61 = tpu.dynamic_rotate %40 by %c16_i32_20 dim 1 : vector<4x128xf32>, i32 -> vector<4x128xf32>
    %c16_i32_21 = arith.constant 16 : i32
    %62 = vector.broadcast %c16_i32_21 : i32 to vector<1x128xi32>
    %63 = arith.cmpi sge, %1, %62 : vector<1x128xi32>
    %c16_i32_22 = arith.constant 16 : i32
    %64 = tpu.dynamic_rotate %42 by %c16_i32_22 dim 1 : vector<4x128xf32>, i32 -> vector<4x128xf32>
    %65 = vector.shape_cast %63 : vector<1x128xi1> to vector<1x128xi1>
    %66 = vector.broadcast %65 : vector<1x128xi1> to vector<4x128xi1>
    %67 = arith.select %66, %61, %64 : vector<4x128xi1>, vector<4x128xf32>
    %68 = arith.andi %9, %33 : vector<1x128xi1>
    %c0_i32_23 = arith.constant 0 : i32
    %69 = arith.sitofp %c0_i32_23 : i32 to f32
    %70 = vector.shape_cast %68 : vector<1x128xi1> to vector<1x128xi1>
    %71 = vector.broadcast %70 : vector<1x128xi1> to vector<4x128xi1>
    %72 = vector.broadcast %69 : f32 to vector<4x128xf32>
    %73 = arith.select %71, %67, %72 : vector<4x128xi1>, vector<4x128xf32>
    %c0_24 = arith.constant 0 : index
    %c0_25 = arith.constant 0 : index
    %c1 = arith.constant 1 : index
    %c0_26 = arith.constant 0 : index
    %74 = vector.load %arg7[%c0_24, %c0_25, %c1, %c0_26] : memref<1x4x9x128xf32, #tpu.memory_space<vmem>>, vector<1x4x1x128xf32>
    %75 = vector.shape_cast %74 : vector<1x4x1x128xf32> to vector<4x128xf32>
    %76 = vector.shape_cast %73 : vector<4x128xf32> to vector<1x4x1x128xf32>
    tpu.vector_store %arg7[%c0_24, %c0_25, %c1, %c0_26], %76 {strides = array<i32>} : memref<1x4x9x128xf32, #tpu.memory_space<vmem>>, vector<1x4x1x128xf32>,
    %c15_i32_27 = arith.constant 15 : i32
    %77 = tpu.dynamic_rotate %40 by %c15_i32_27 dim 1 : vector<4x128xf32>, i32 -> vector<4x128xf32>
    %c15_i32_28 = arith.constant 15 : i32
    %78 = vector.broadcast %c15_i32_28 : i32 to vector<1x128xi32>
    %79 = arith.cmpi sge, %1, %78 : vector<1x128xi32>
    %c15_i32_29 = arith.constant 15 : i32
    %80 = tpu.dynamic_rotate %42 by %c15_i32_29 dim 1 : vector<4x128xf32>, i32 -> vector<4x128xf32>
    %81 = vector.shape_cast %79 : vector<1x128xi1> to vector<1x128xi1>
    %82 = vector.broadcast %81 : vector<1x128xi1> to vector<4x128xi1>
    %83 = arith.select %82, %77, %80 : vector<4x128xi1>, vector<4x128xf32>
    %84 = arith.andi %9, %38 : vector<1x128xi1>
    %c0_i32_30 = arith.constant 0 : i32
    %85 = arith.sitofp %c0_i32_30 : i32 to f32
    %86 = vector.shape_cast %84 : vector<1x128xi1> to vector<1x128xi1>
    %87 = vector.broadcast %86 : vector<1x128xi1> to vector<4x128xi1>
    %88 = vector.broadcast %85 : f32 to vector<4x128xf32>
    %89 = arith.select %87, %83, %88 : vector<4x128xi1>, vector<4x128xf32>
    %c0_31 = arith.constant 0 : index
    %c0_32 = arith.constant 0 : index
    %c2 = arith.constant 2 : index
    %c0_33 = arith.constant 0 : index
    %90 = vector.load %arg7[%c0_31, %c0_32, %c2, %c0_33] : memref<1x4x9x128xf32, #tpu.memory_space<vmem>>, vector<1x4x1x128xf32>
    %91 = vector.shape_cast %90 : vector<1x4x1x128xf32> to vector<4x128xf32>
    %92 = vector.shape_cast %89 : vector<4x128xf32> to vector<1x4x1x128xf32>
    tpu.vector_store %arg7[%c0_31, %c0_32, %c2, %c0_33], %92 {strides = array<i32>} : memref<1x4x9x128xf32, #tpu.memory_space<vmem>>, vector<1x4x1x128xf32>,
    %c1_i32_34 = arith.constant 1 : i32
    %93 = tpu.dynamic_rotate %40 by %c1_i32_34 dim 1 : vector<4x128xf32>, i32 -> vector<4x128xf32>
    %c1_i32_35 = arith.constant 1 : i32
    %94 = vector.broadcast %c1_i32_35 : i32 to vector<1x128xi32>
    %95 = arith.cmpi sge, %1, %94 : vector<1x128xi32>
    %c1_i32_36 = arith.constant 1 : i32
    %96 = tpu.dynamic_rotate %42 by %c1_i32_36 dim 1 : vector<4x128xf32>, i32 -> vector<4x128xf32>
    %97 = vector.shape_cast %95 : vector<1x128xi1> to vector<1x128xi1>
    %98 = vector.broadcast %97 : vector<1x128xi1> to vector<4x128xi1>
    %99 = arith.select %98, %93, %96 : vector<4x128xi1>, vector<4x128xf32>
    %100 = arith.andi %16, %28 : vector<1x128xi1>
    %c0_i32_37 = arith.constant 0 : i32
    %101 = arith.sitofp %c0_i32_37 : i32 to f32
    %102 = vector.shape_cast %100 : vector<1x128xi1> to vector<1x128xi1>
    %103 = vector.broadcast %102 : vector<1x128xi1> to vector<4x128xi1>
    %104 = vector.broadcast %101 : f32 to vector<4x128xf32>
    %105 = arith.select %103, %99, %104 : vector<4x128xi1>, vector<4x128xf32>
    %c0_38 = arith.constant 0 : index
    %c0_39 = arith.constant 0 : index
    %c3 = arith.constant 3 : index
    %c0_40 = arith.constant 0 : index
    %106 = vector.load %arg7[%c0_38, %c0_39, %c3, %c0_40] : memref<1x4x9x128xf32, #tpu.memory_space<vmem>>, vector<1x4x1x128xf32>
    %107 = vector.shape_cast %106 : vector<1x4x1x128xf32> to vector<4x128xf32>
    %108 = vector.shape_cast %105 : vector<4x128xf32> to vector<1x4x1x128xf32>
    tpu.vector_store %arg7[%c0_38, %c0_39, %c3, %c0_40], %108 {strides = array<i32>} : memref<1x4x9x128xf32, #tpu.memory_space<vmem>>, vector<1x4x1x128xf32>,
    %109 = arith.andi %16, %33 : vector<1x128xi1>
    %c0_i32_41 = arith.constant 0 : i32
    %110 = arith.sitofp %c0_i32_41 : i32 to f32
    %111 = vector.shape_cast %109 : vector<1x128xi1> to vector<1x128xi1>
    %112 = vector.broadcast %111 : vector<1x128xi1> to vector<4x128xi1>
    %113 = vector.broadcast %110 : f32 to vector<4x128xf32>
    %114 = arith.select %112, %40, %113 : vector<4x128xi1>, vector<4x128xf32>
    %c0_42 = arith.constant 0 : index
    %c0_43 = arith.constant 0 : index
    %c4 = arith.constant 4 : index
    %c0_44 = arith.constant 0 : index
    %115 = vector.load %arg7[%c0_42, %c0_43, %c4, %c0_44] : memref<1x4x9x128xf32, #tpu.memory_space<vmem>>, vector<1x4x1x128xf32>
    %116 = vector.shape_cast %115 : vector<1x4x1x128xf32> to vector<4x128xf32>
    %117 = vector.shape_cast %114 : vector<4x128xf32> to vector<1x4x1x128xf32>
    tpu.vector_store %arg7[%c0_42, %c0_43, %c4, %c0_44], %117 {strides = array<i32>} : memref<1x4x9x128xf32, #tpu.memory_space<vmem>>, vector<1x4x1x128xf32>,
    %c127_i32 = arith.constant 127 : i32
    %118 = tpu.dynamic_rotate %40 by %c127_i32 dim 1 : vector<4x128xf32>, i32 -> vector<4x128xf32>
    %c127_i32_45 = arith.constant 127 : i32
    %119 = vector.broadcast %c127_i32_45 : i32 to vector<1x128xi32>
    %120 = arith.cmpi slt, %1, %119 : vector<1x128xi32>
    %c127_i32_46 = arith.constant 127 : i32
    %121 = tpu.dynamic_rotate %44 by %c127_i32_46 dim 1 : vector<4x128xf32>, i32 -> vector<4x128xf32>
    %122 = vector.shape_cast %120 : vector<1x128xi1> to vector<1x128xi1>
    %123 = vector.broadcast %122 : vector<1x128xi1> to vector<4x128xi1>
    %124 = arith.select %123, %118, %121 : vector<4x128xi1>, vector<4x128xf32>
    %125 = arith.andi %16, %38 : vector<1x128xi1>
    %c0_i32_47 = arith.constant 0 : i32
    %126 = arith.sitofp %c0_i32_47 : i32 to f32
    %127 = vector.shape_cast %125 : vector<1x128xi1> to vector<1x128xi1>
    %128 = vector.broadcast %127 : vector<1x128xi1> to vector<4x128xi1>
    %129 = vector.broadcast %126 : f32 to vector<4x128xf32>
    %130 = arith.select %128, %124, %129 : vector<4x128xi1>, vector<4x128xf32>
    %c0_48 = arith.constant 0 : index
    %c0_49 = arith.constant 0 : index
    %c5 = arith.constant 5 : index
    %c0_50 = arith.constant 0 : index
    %131 = vector.load %arg7[%c0_48, %c0_49, %c5, %c0_50] : memref<1x4x9x128xf32, #tpu.memory_space<vmem>>, vector<1x4x1x128xf32>
    %132 = vector.shape_cast %131 : vector<1x4x1x128xf32> to vector<4x128xf32>
    %133 = vector.shape_cast %130 : vector<4x128xf32> to vector<1x4x1x128xf32>
    tpu.vector_store %arg7[%c0_48, %c0_49, %c5, %c0_50], %133 {strides = array<i32>} : memref<1x4x9x128xf32, #tpu.memory_space<vmem>>, vector<1x4x1x128xf32>,
    %c113_i32 = arith.constant 113 : i32
    %134 = tpu.dynamic_rotate %40 by %c113_i32 dim 1 : vector<4x128xf32>, i32 -> vector<4x128xf32>
    %c113_i32_51 = arith.constant 113 : i32
    %135 = vector.broadcast %c113_i32_51 : i32 to vector<1x128xi32>
    %136 = arith.cmpi slt, %1, %135 : vector<1x128xi32>
    %c113_i32_52 = arith.constant 113 : i32
    %137 = tpu.dynamic_rotate %44 by %c113_i32_52 dim 1 : vector<4x128xf32>, i32 -> vector<4x128xf32>
    %138 = vector.shape_cast %136 : vector<1x128xi1> to vector<1x128xi1>
    %139 = vector.broadcast %138 : vector<1x128xi1> to vector<4x128xi1>
    %140 = arith.select %139, %134, %137 : vector<4x128xi1>, vector<4x128xf32>
    %141 = arith.andi %23, %28 : vector<1x128xi1>
    %c0_i32_53 = arith.constant 0 : i32
    %142 = arith.sitofp %c0_i32_53 : i32 to f32
    %143 = vector.shape_cast %141 : vector<1x128xi1> to vector<1x128xi1>
    %144 = vector.broadcast %143 : vector<1x128xi1> to vector<4x128xi1>
    %145 = vector.broadcast %142 : f32 to vector<4x128xf32>
    %146 = arith.select %144, %140, %145 : vector<4x128xi1>, vector<4x128xf32>
    %c0_54 = arith.constant 0 : index
    %c0_55 = arith.constant 0 : index
    %c6 = arith.constant 6 : index
    %c0_56 = arith.constant 0 : index
    %147 = vector.load %arg7[%c0_54, %c0_55, %c6, %c0_56] : memref<1x4x9x128xf32, #tpu.memory_space<vmem>>, vector<1x4x1x128xf32>
    %148 = vector.shape_cast %147 : vector<1x4x1x128xf32> to vector<4x128xf32>
    %149 = vector.shape_cast %146 : vector<4x128xf32> to vector<1x4x1x128xf32>
    tpu.vector_store %arg7[%c0_54, %c0_55, %c6, %c0_56], %149 {strides = array<i32>} : memref<1x4x9x128xf32, #tpu.memory_space<vmem>>, vector<1x4x1x128xf32>,
    %c112_i32 = arith.constant 112 : i32
    %150 = tpu.dynamic_rotate %40 by %c112_i32 dim 1 : vector<4x128xf32>, i32 -> vector<4x128xf32>
    %c112_i32_57 = arith.constant 112 : i32
    %151 = vector.broadcast %c112_i32_57 : i32 to vector<1x128xi32>
    %152 = arith.cmpi slt, %1, %151 : vector<1x128xi32>
    %c112_i32_58 = arith.constant 112 : i32
    %153 = tpu.dynamic_rotate %44 by %c112_i32_58 dim 1 : vector<4x128xf32>, i32 -> vector<4x128xf32>
    %154 = vector.shape_cast %152 : vector<1x128xi1> to vector<1x128xi1>
    %155 = vector.broadcast %154 : vector<1x128xi1> to vector<4x128xi1>
    %156 = arith.select %155, %150, %153 : vector<4x128xi1>, vector<4x128xf32>
    %157 = arith.andi %23, %33 : vector<1x128xi1>
    %c0_i32_59 = arith.constant 0 : i32
    %158 = arith.sitofp %c0_i32_59 : i32 to f32
    %159 = vector.shape_cast %157 : vector<1x128xi1> to vector<1x128xi1>
    %160 = vector.broadcast %159 : vector<1x128xi1> to vector<4x128xi1>
    %161 = vector.broadcast %158 : f32 to vector<4x128xf32>
    %162 = arith.select %160, %156, %161 : vector<4x128xi1>, vector<4x128xf32>
    %c0_60 = arith.constant 0 : index
    %c0_61 = arith.constant 0 : index
    %c7 = arith.constant 7 : index
    %c0_62 = arith.constant 0 : index
    %163 = vector.load %arg7[%c0_60, %c0_61, %c7, %c0_62] : memref<1x4x9x128xf32, #tpu.memory_space<vmem>>, vector<1x4x1x128xf32>
    %164 = vector.shape_cast %163 : vector<1x4x1x128xf32> to vector<4x128xf32>
    %165 = vector.shape_cast %162 : vector<4x128xf32> to vector<1x4x1x128xf32>
    tpu.vector_store %arg7[%c0_60, %c0_61, %c7, %c0_62], %165 {strides = array<i32>} : memref<1x4x9x128xf32, #tpu.memory_space<vmem>>, vector<1x4x1x128xf32>,
    %c111_i32 = arith.constant 111 : i32
    %166 = tpu.dynamic_rotate %40 by %c111_i32 dim 1 : vector<4x128xf32>, i32 -> vector<4x128xf32>
    %c111_i32_63 = arith.constant 111 : i32
    %167 = vector.broadcast %c111_i32_63 : i32 to vector<1x128xi32>
    %168 = arith.cmpi slt, %1, %167 : vector<1x128xi32>
    %c111_i32_64 = arith.constant 111 : i32
    %169 = tpu.dynamic_rotate %44 by %c111_i32_64 dim 1 : vector<4x128xf32>, i32 -> vector<4x128xf32>
    %170 = vector.shape_cast %168 : vector<1x128xi1> to vector<1x128xi1>
    %171 = vector.broadcast %170 : vector<1x128xi1> to vector<4x128xi1>
    %172 = arith.select %171, %166, %169 : vector<4x128xi1>, vector<4x128xf32>
    %173 = arith.andi %23, %38 : vector<1x128xi1>
    %c0_i32_65 = arith.constant 0 : i32
    %174 = arith.sitofp %c0_i32_65 : i32 to f32
    %175 = vector.shape_cast %173 : vector<1x128xi1> to vector<1x128xi1>
    %176 = vector.broadcast %175 : vector<1x128xi1> to vector<4x128xi1>
    %177 = vector.broadcast %174 : f32 to vector<4x128xf32>
    %178 = arith.select %176, %172, %177 : vector<4x128xi1>, vector<4x128xf32>
    %c0_66 = arith.constant 0 : index
    %c0_67 = arith.constant 0 : index
    %c8 = arith.constant 8 : index
    %c0_68 = arith.constant 0 : index
    %179 = vector.load %arg7[%c0_66, %c0_67, %c8, %c0_68] : memref<1x4x9x128xf32, #tpu.memory_space<vmem>>, vector<1x4x1x128xf32>
    %180 = vector.shape_cast %179 : vector<1x4x1x128xf32> to vector<4x128xf32>
    %181 = vector.shape_cast %178 : vector<4x128xf32> to vector<1x4x1x128xf32>
    tpu.vector_store %arg7[%c0_66, %c0_67, %c8, %c0_68], %181 {strides = array<i32>} : memref<1x4x9x128xf32, #tpu.memory_space<vmem>>, vector<1x4x1x128xf32>,
    return
  }
  func.func @transform_0(%arg0: i32, %arg1: i32, %arg2: i32) -> (i32, i32) {
    %c0_i32 = arith.constant 0 : i32
    %c0_i32_0 = arith.constant 0 : i32
    return %c0_i32, %arg2 : i32, i32
  }
  func.func @transform_1(%arg0: i32, %arg1: i32, %arg2: i32) -> (i32, i32, i32) {
    %c0_i32 = arith.constant 0 : i32
    return %arg0, %arg1, %arg2 : i32, i32, i32
  }
  func.func @transform_2(%arg0: i32, %arg1: i32, %arg2: i32) -> (i32, i32, i32) {
    %c1_i32 = arith.constant 1 : i32
    %0 = arith.subi %arg2, %c1_i32 : i32
    %c0_i32 = arith.constant 0 : i32
    %1 = arith.maxsi %0, %c0_i32 : i32
    %c0_i32_0 = arith.constant 0 : i32
    return %arg0, %arg1, %1 : i32, i32, i32
  }
  func.func @transform_3(%arg0: i32, %arg1: i32, %arg2: i32) -> (i32, i32, i32) {
    %c1_i32 = arith.constant 1 : i32
    %0 = arith.addi %arg2, %c1_i32 : i32
    %c1_i32_0 = arith.constant 1 : i32
    %1 = arith.minsi %0, %c1_i32_0 : i32
    %c0_i32 = arith.constant 0 : i32
    return %arg0, %arg1, %1 : i32, i32, i32
  }
  func.func @transform_4(%arg0: i32, %arg1: i32, %arg2: i32) -> (i32, i32, i32, i32) {
    %c0_i32 = arith.constant 0 : i32
    %c0_i32_0 = arith.constant 0 : i32
    return %arg0, %arg1, %c0_i32, %arg2 : i32, i32, i32, i32
  }
}

</mosaic_0001>

<bundles_post_ra>
// kernel: tpu_custom_call.1
= control target key start
LH: loop header
LB: loop body
LE: loop exit
PB: predicated region body
PF: predicated region fallthrough
CT: control target
= control target key end

     0   :  { %s1851_s0 = inlined_call_operand.hbm [shape: s32[1,256], index: 0, kind: input, shape index: {}]   ;;  %s1852_s1 = inlined_call_operand.hbm [shape: f32[2,4,256], index: 1, kind: input, shape index: {}]   ;;  %s1853_s2 = inlined_call_operand.hbm [shape: f32[2,4,256], index: 2, kind: input, shape index: {}]   ;;  %s1854_s3 = inlined_call_operand.hbm [shape: f32[2,4,256], index: 3, kind: input, shape index: {}]   ;;  %s1855_s4 = inlined_call_operand.vmem [shape: f32[2,4,9,256], index: 4, kind: output, shape index: {}]  }
   0x1   :  { %1867 = sst [smem:[#allocation25_spill]] %s1851_s0 }
   0x2   :  { %1868 = sst [smem:[#allocation26_spill]] %s1852_s1 }
   0x3   :  { %1869 = sst [smem:[#allocation27_spill]] %s1853_s2 }
   0x4   :  { %1870 = sst [smem:[#allocation28_spill]] %s1855_s4 }
   0x5   :  { %9 = vsyncpa [#allocation3], 0 }
   0x6   :  { %11 = vsyncpa [#allocation3 + $0x1], 0 }
   0x7   :  { %12 = vsyncpa [#allocation5], 0 }
   0x8   :  { %14 = vsyncpa [#allocation5 + $0x1], 0 }
   0x9   :  { %15 = vsyncpa [#allocation8], 0 }
   0xa   :  { %17 = vsyncpa [#allocation8 + $0x1], 0  ;;  %s1371_s15 = smov 0   ;;  %s1373_s16 = smov 0  }
   0xb   :  { %s1375_s17 = smov 0   ;;  %s1377_s18 = smov 0  }
   0xc   :  { %s1379_s19 = smov 0   ;;  %s1381_s20 = smov 0  }
   0xd   :  { %s1383_s21 = smov 0   ;;  %s1385_s22 = smov 0  }
   0xe   :  { %s1387_s23 = smov 0   ;;  %s1389_s24 = smov 0  }
   0xf   :  { %s1391_s25 = smov 0   ;;  %s1393_s26 = smov 0  }
  0x10   :  { %s1395_s27 = smov 0   ;;  %s1397_s28 = smov 0  }
  0x11   :  { %s1399_s29 = smov 0   ;;  %s1401_s30 = smov 0  }
  0x12   :  { %s1403_s5 = smov 0  }
  0x13 LB: > { %1871 = sst [smem:[#allocation14_spill]] %s1303_s23  ;;  %s1455_s6 = sadd.s32 4294967295, %s1335_s5   ;;  %s1335_s5 = sphi %s1403_s5, %s23_s5   ;;  %s1331_s30 = sphi %s1401_s30, %s1939_s30   ;;  %s1327_s29 = sphi %s1399_s29, %s1938_s29   ;;  %s1323_s28 = sphi %s1397_s28, %s1937_s28   ;;  %s1319_s27 = sphi %s1395_s27, %s1923_s27   ;;  %s1315_s26 = sphi %s1393_s26, %s1922_s26   ;;  %s1311_s25 = sphi %s1391_s25, %s1936_s25   ;;  %s1307_s24 = sphi %s1389_s24, %s1935_s24   ;;  %s1303_s23 = sphi %s1387_s23, %s1920_s23   ;;  %s1299_s22 = sphi %s1385_s22, %s1934_s22   ;;  %s1295_s21 = sphi %s1383_s21, %s1933_s21   ;;  %s1291_s20 = sphi %s1381_s20, %s1932_s20   ;;  %s1287_s19 = sphi %s1379_s19, %s1931_s19   ;;  %s1283_s18 = sphi %s1377_s18, %s1930_s18   ;;  %s1279_s17 = sphi %s1375_s17, %s1929_s17   ;;  %s1275_s16 = sphi %s1373_s16, %s1927_s16   ;;  %s1271_s15 = sphi %s1371_s15, %s1926_s15  }
  0x14   : > { %1872 = sst [smem:[#allocation15_spill]] %s1315_s26  ;;  %p1859_p0 = scmp.eq.s32.totalorder %s1335_s5, 0 }
  0x15   : > { %1873 = sst [smem:[#allocation16_spill]] %s1319_s27  ;;  %p1860_p1 = scmp.eq.s32.totalorder %s1455_s6, 0 }
  0x16   : > { %1874 = sst [smem:[#allocation17_spill]] %s1323_s28  ;;  %p86_p2 = scmp.ne.s32.totalorder %s1303_s23, %s1299_s22 }
  0x17   : > { %1875 = sst [smem:[#allocation18_spill]] %s1327_s29  ;;  %p92_p3 = scmp.ne.s32.totalorder %s1299_s22, %s1295_s21 }
  0x18   : > { %p192_p4 = scmp.eq.s32.totalorder %s1455_s6, 3  ;;  %p1466_p5 = por %p86_p2, %p1859_p0 }
  0x19   : > { %p1472_p6 = por %p92_p3, %p1860_p1  ;;  %p915_p8 = scmp.lt.s32.totalorder %s1335_s5, 4 }
  0x1a   : > { %p1476_p7 = por %p192_p4, %p86_p2  ;;  %s235_s11 = sand.u32 1, %s1335_s5  }
  0x1b   : > { %s1877_s9 = scalar_select %p1472_p6, 1, 0 }
  0x1c   : > { %s1879_s10 = scalar_select %p1476_p7, 1, 0 }
  0x1d   : > { %1878 = sst [smem:[#allocation19_spill]] %s1877_s9  ;;  %s237_s12 = sand.u32 1, %s1303_s23  }
  0x1e   : > { %1880 = sst [smem:[#allocation20_spill]] %s1879_s10  ;;  %s873_s13 = sshll.u32 %s237_s12, 2 }
  0x1f   : > { %s874_s14 = sshll.u32 %s1331_s30, 1  ;;  %s239_s4 = scalar_lea.vmem [#allocation4], %s873_s13 }
  0x20   : > { %s245_s21 = sadd.s32 %s1327_s29, %s874_s14  ;;  %s251_s28 = sshll.u32 %s239_s4, 4  ;;  %s252_s28 = int_to_ptr.vmem [resolvable:$true] %s251_s28 }
  0x21   : > { %s875_s7 = sshll.u32 %s245_s21, 2  ;;  %s1881_s1 = sld [smem:[#allocation26_spill]] }
  0x22   : > { %p906_p9 = pnand %p915_p8, %p1466_p5  ;;  %p883_p10 = scmp.ge.s32.totalorder %s1335_s5, 1 }
  0x23   : > { %p308_p11 = scmp.lt.s32.totalorder %s1335_s5, 5  ;;  %s1494_s14 = scalar_lea.sflag [#allocation5], %s235_s11 }
  0x24   : > { %p56_p13 = scmp.ne.s32.totalorder %s1315_s26, %s1311_s25  ;;  %p62_p2 = scmp.ne.s32.totalorder %s1311_s25, %s1307_s24 }
  0x25   : > { %p1497_p12 = pnand %p883_p10, %p308_p11  ;;  %s1883_s0 = sld [smem:[#allocation25_spill]] }
  0x26   : > { %p58_p3 = por %p1859_p0, %p56_p13  ;;  %p1515_p4 = por %p1860_p1, %p62_p2 }
  0x27   : > { %s247_s10 = scalar_lea.hbm %s1881_s1, %s875_s7  ;;  %s218_s7 = sand.u32 1, %s1315_s26  }
  0x28   : > { %s249_s12 = sshll.u32 %s247_s10, 4  ;;  %s221_s13 = scalar_lea.vmem [#allocation2], %s218_s7  ;;  %s250_s12 = int_to_ptr.hbm [resolvable:$true] %s249_s12 }
  0x29   : > { %908 = dma.hbm_to_vmem [thread:$0]  (!%p906_p9), %s250_s12, 64, %s252_s28, %s1494_s14  }
  0x2a   : > { %s228_s24 = sshll.u32 %s221_s13, 4  ;;  %p903_p5 = pnand %p915_p8, %p58_p3  ;;  %s229_s24 = int_to_ptr.vmem [resolvable:$true] %s228_s24 }
  0x2b   : > { %s224_s10 = scalar_lea.hbm %s1883_s0, %s1327_s29  ;;  %s219_s21 = scalar_lea.sflag [#allocation3], %s218_s7 }
  0x2c   : > { %s226_s11 = sshll.u32 %s224_s10, 4  ;;  %p122_p9 = scmp.ne.s32.totalorder %s1291_s20, %s1287_s19  ;;  %s227_s11 = int_to_ptr.hbm [resolvable:$true] %s226_s11 }
  0x2d   : > { %905 = dma.hbm_to_vmem [thread:$0]  (!%p903_p5), %s227_s11, 16, %s229_s24, %s219_s21  }
  0x2e   : > { %p128_p10 = scmp.ne.s32.totalorder %s1287_s19, %s1283_s18  ;;  %s260_s8 = sand.u32 1, %s1291_s20  }
  0x2f   : > { %p124_p11 = por %p122_p9, %p1859_p0  ;;  %s876_s10 = sshll.u32 %s260_s8, 2 }
  0x30   : > { %p1531_p13 = por %p128_p10, %p1860_p1  ;;  %s1861_s13 = sshll.u32 %s1331_s30, 3 }
  0x31   : > { %s1886_s2 = sld [smem:[#allocation27_spill]]  ;;  %s262_s1 = scalar_lea.vmem [#allocation6], %s876_s10 }
  0x32   : > { %s277_s11 = sshll.u32 %s262_s1, 4  ;;  %p909_p2 = pnand %p915_p8, %p124_p11  ;;  %s278_s11 = int_to_ptr.vmem [resolvable:$true] %s277_s11 }
  0x34   : > { %p1125_p5 = pneg %p909_p2 }
  0x37   : > { %s273_s7 = scalar_lea.hbm %s1886_s2, %s1861_s13 }
  0x38   : > { %s275_s24 = sshll.u32 %s273_s7, 4  ;;  %s276_s24 = int_to_ptr.hbm [resolvable:$true] %s275_s24 }
  0x39   : > { %s1121_s18 = sshra.s32 %s276_s24, 4  ;;  %s1122_s18 = int_to_ptr.hbm [resolvable:$true] %s1121_s18 }
  0x3a   : > { %s1123_s21 = scalar_lea.hbm %s1122_s18, 4  ;;  %p1129_p0 = scmp.lt.s32.totalorder %s1122_s18, %s1886_s2 }
  0x3b   : > { %p1124_p3 = scmp.ne.s32.totalorder %s1122_s18, %s1123_s21 }
  0x3d   : > { %p1126_p9 = pnand %p1125_p5, %p1124_p3 }
  0x3f   : > { %p1127_p10 = pneg %p1126_p9 }
  0x41   : > { %p1132_p1 = pnand %p1129_p0, %p1127_p10 }
  0x43   : > { %1135 = shalt.err (!%p1132_p1)
}
  0x44   : > { %911 = dma.hbm_to_vmem [thread:$0]  (!%p909_p2), %s276_s24, 64, %s278_s11, %s1494_s14  }
  0x45   : > { %s115_s0 = sadd.s32 1, %s1291_s20  ;;  %s35_s1 = sadd.s32 1, %s1327_s29 }
  0x46   : > { %p36_p0 = scmp.ge.s32.totalorder %s35_s1, 2  ;;  %s151_s27 = sadd.s32 1, %s1279_s17 }
  0x47   : > { %s1888_s12 = sadd.s32 1, %s1331_s30  ;;  %s1890_s14 = sadd.s32 1, %s1315_s26 }
  0x48   : > { %s1941_s1 = smov (%p36_p0, %s35_s1), 0  ;;  %s1943_s12 = smov (!%p36_p0, %s1888_s12), %s1331_s30 }
  0x49   : > { %1887 = sst [smem:[#allocation21_spill]] %s1941_s1  ;;  %s46_s10 = ssub.s32 %s1327_s29, %s1941_s1 }
  0x4a   : > { %p44_p1 = scmp.ge.s32.totalorder %s1943_s12, 2  ;;  %p47_p11 = scmp.eq.s32.totalorder %s46_s10, 0 }
  0x4b   : > { %p158_p2 = scmp.ne.s32.totalorder %s1279_s17, %s1275_s16  ;;  %p164_p5 = scmp.ne.s32.totalorder %s1275_s16, %s1271_s15 }
  0x4c   : > { %s1945_s12 = smov (%p44_p1, %s1943_s12), 0  ;;  %s1892_s18 = sadd.s32 1, %s1303_s23 }
  0x4d   : > { %1889 = sst [smem:[#allocation22_spill]] %s1945_s12  ;;  %s72_s11 = ssub.s32 %s1331_s30, %s1945_s12 }
  0x4e   : > { %s1562_s7 = scalar_select %p47_p11, %s1315_s26, %s1890_s14  }
  0x4f   : > { %s76_s24 = sor.u32 %s72_s11, %s46_s10  ;;  %p1894_p9 = scmp.eq.s32.totalorder %s1455_s6, 0 }
  0x50   : > { %1891 = sst [smem:[#allocation23_spill]] %s1562_s7  ;;  %p77_p3 = scmp.eq.s32.totalorder %s76_s24, 0 }
  0x51   : > { %p1577_p10 = por %p164_p5, %p1894_p9  ;;  %p1896_p0 = scmp.eq.s32.totalorder %s1335_s5, 0 }
  0x52   : > { %s1573_s21 = scalar_select %p77_p3, %s1303_s23, %s1892_s18  }
  0x53   : > { %p1583_p1 = por %p158_p2, %p1896_p0  ;;  %p113_p11 = scmp.eq.s32.totalorder %s72_s11, 0 }
  0x54   : > { %1893 = sst [smem:[#allocation24_spill]] %s1573_s21  ;;  %s284_s14 = sand.u32 1, %s1279_s17  }
  0x55   : > { %s1589_s10 = scalar_select %p113_p11, %s1291_s20, %s115_s0  }
  0x56   : > { %s880_s15 = sshll.u32 %s284_s14, 2  ;;  %s1898_s24 = sshll.u32 %s1331_s30, 3 }
  0x57   : > { %s1267_s2 = sadd.s32 4, %s1898_s24  ;;  %s288_s7 = scalar_lea.vmem [#allocation7], %s880_s15 }
  0x58   : > { %s299_s1 = scalar_lea.hbm %s1854_s3, %s1267_s2  ;;  %s303_s26 = sshll.u32 %s288_s7, 4  ;;  %s304_s26 = int_to_ptr.vmem [resolvable:$true] %s303_s26 }
  0x59   : > { %s301_s29 = sshll.u32 %s299_s1, 4  ;;  %p912_p2 = pnand %p915_p8, %p1583_p1  ;;  %s302_s29 = int_to_ptr.hbm [resolvable:$true] %s301_s29 }
  0x5a   : > { %s1597_s21 = scalar_select %p113_p11, %s1279_s17, %s151_s27  }
  0x5b   : > { %s285_s11 = scalar_lea.sflag [#allocation8], %s284_s14  ;;  %s1151_s0 = sshra.s32 %s302_s29, 4  ;;  %s1152_s0 = int_to_ptr.hbm [resolvable:$true] %s1151_s0 }
  0x5c   : > { %s1153_s23 = scalar_lea.hbm %s1152_s0, 4  ;;  %p1155_p5 = pneg %p912_p2 }
  0x5d   : > { %p1154_p3 = scmp.ne.s32.totalorder %s1152_s0, %s1153_s23  ;;  %s1158_s1 = scalar_lea.hbm %s1854_s3, 16 }
  0x5e   : > { %p1160_p7 = scmp.lt.s32.totalorder %s1158_s1, %s1153_s23 }
  0x5f   : > { %p1156_p9 = pnand %p1155_p5, %p1154_p3 }
  0x61   : > { %p1157_p0 = pneg %p1156_p9 }
  0x63   : > { %p1162_p11 = pnand %p1160_p7, %p1157_p0 }
  0x65   : > { %1165 = shalt.err (!%p1162_p11)
}
  0x66   : > { %914 = dma.hbm_to_vmem [thread:$0]  (!%p912_p2), %s302_s29, 64, %s304_s26, %s285_s11  }
  0x67   : > { %312 = sbr.rel (%p1497_p12) target bundleno = 292 (0x124), region = 36  ;;  %s314_s13 = sand.u32 (!%p1497_p12), 1, %s1311_s25  }
  0x68   : > { %s315_s27 = scalar_lea.sflag (!%p1497_p12), [#allocation3], %s314_s13  ;;  %s1609_s7 = scalar_lea.vmem (!%p1497_p12), [#allocation2], %s314_s13 }
  0x6c   : > { %1250 = dma.done.wait (%p1515_p4), %s315_s27, 16  }
  0x6d   : > { %1252 = vsyncadd (%p1515_p4), %s315_s27, 4294967280  ;;  %s323_s14 = sand.u32 1, %s1455_s6   ;;  %s325_s26 = sand.u32 1, %s1299_s22  }
  0x6e   : > { %s884_s29 = sshll.u32 %s325_s26, 2  ;;  %s324_s4 = scalar_lea.sflag [#allocation5], %s323_s14 }
  0x6f   : > { %s327_s15 = scalar_lea.vmem [#allocation4], %s884_s29 }
  0x70   : > { %1254 = dma.done.wait (%p1472_p6), %s324_s4, 64  }
  0x71   : > { %1256 = vsyncadd (%p1472_p6), %s324_s4, 4294967232  ;;  %s335_s24 = sand.u32 1, %s1287_s19  }
  0x72   : > { %s885_s28 = sshll.u32 %s335_s24, 2 }
  0x73   : > { %s337_s18 = scalar_lea.vmem [#allocation6], %s885_s28 }
  0x74   : > { %1258 = dma.done.wait (%p1531_p13), %s324_s4, 64  }
  0x75   : > { %1260 = vsyncadd (%p1531_p13), %s324_s4, 4294967232  ;;  %s343_s6 = sand.u32 1, %s1275_s16  }
  0x76   : > { %s886_s11 = sshll.u32 %s343_s6, 2  ;;  %s344_s0 = scalar_lea.sflag [#allocation8], %s343_s6 }
  0x77   : > { %s347_s12 = scalar_lea.vmem [#allocation7], %s886_s11 }
  0x78   : > { %1262 = dma.done.wait (%p1577_p10), %s344_s0, 64  }
  0x79   : > { %1264 = vsyncadd (%p1577_p10), %s344_s0, 4294967232  ;;  %v1633_v0 = vld [vmem:[%s327_s15] sm:$0xf]  ;;  %s1337_s2 = smov 16   ;;  %s1338_s1 = smov 17   ;;  %v394_v3 = vlaneseq  ;;  %v1345_v11 = vmov 0  }
  0x7a   : > { %454 = vrot.lane.b32.xlu1 %v1633_v0, %s1337_s2  ;;  %430 = vrot.lane.b32.xlu0 %v1633_v0, %s1338_s1  ;;  %s1339_s9 = smov 15   ;;  %v428_v1 = vld [vmem:[%s337_s18] sm:$0xf]  ;;  %s1340_s13 = smov 1   ;;  %v429_v2 = vld [vmem:[%s347_s12] sm:$0xf] }
  0x7b   : > { %478 = vrot.lane.b32.xlu2 %v1633_v0, %s1339_s9  ;;  %s1900_s27 = sld [smem:[#allocation16_spill]]  ;;  %s1341_s8 = smov 127   ;;  %v396_v6 = vld [vmem:[%s1609_s7] sm:$0x1]  ;;  %v1649_v7 = vand.u32 127, %v394_v3 }
  0x7c   : > { %s1342_s23 = smov 113   ;;  %s1343_s14 = smov 112   ;;  %vm424_vm0 = vcmp.ge.s32.totalorder %v396_v6, 4294967295  ;;  %vm425_vm1 = vcmp.lt.s32.totalorder %v396_v6, 15  ;;  %vm421_vm9 = vcmp.ge.s32.totalorder %v396_v6, 0  ;;  %vm422_vm10 = vcmp.lt.s32.totalorder %v396_v6, 16 }
  0x7d   : > { %s1344_s29 = smov 111   ;;  %vm1653_vm4 = vmand %vm424_vm0, %vm425_vm1  ;;  %s887_s18 = sshll.u32 %s325_s26, 6  ;;  %vm480_vm7 = vcmp.ge.s32.totalorder %v1649_v7, 15  ;;  %vm418_vm15 = vcmp.ge.s32.totalorder %v396_v6, 1  ;;  %vm419_vm0 = vcmp.lt.s32.totalorder %v396_v6, 17 }
  0x7e   : > { %s1673_s6 = scalar_lea.vmem [#allocation9], %s887_s18  ;;  %vm1676_vm13 = vmand %vm421_vm9, %vm422_vm10  ;;  %vm432_vm9 = vcmp.ge.s32.totalorder %v1649_v7, 17  ;;  %s1913_s0 = sld [smem:[#allocation20_spill]] }
  0x81   : > { %s1644_s4 = sshll.u32 %s1900_s27, 7 }
  0x82   : > { %457 = vrot.lane.b32.xlu1 %v428_v1, %s1337_s2  ;;  %433 = vrot.lane.b32.xlu0 %v428_v1, %s1338_s1  ;;  %s397_s15 = ssub.s32 16, %s1644_s4  ;;  %s400_s24 = ssub.s32 272, %s1644_s4 }
  0x83   : > { %481 = vrot.lane.b32.xlu2 %v428_v1, %s1339_s9  ;;  %v398_v4 = vstv %s397_s15  ;;  %v401_v5 = vstv %s400_s24  ;;  %s404_s7 = ssub.s32 0, %s1644_s4  ;;  %s407_s28 = ssub.s32 256, %s1644_s4 }
  0x84   : > { %vm399_vm2 = vcmp.ge.s32.totalorder %v1649_v7, %v398_v4  ;;  %vm402_vm3 = vcmp.lt.s32.totalorder %v1649_v7, %v401_v5  ;;  %v405_v14 = vstv %s404_s7  ;;  %v408_v15 = vstv %s407_s28  ;;  %s411_s26 = ssub.s32 4294967280, %s1644_s4  ;;  %s414_s11 = ssub.s32 240, %s1644_s4 }
  0x85   : > { %vm1657_vm5 = vmand %vm399_vm2, %vm402_vm3  ;;  %vm406_vm11 = vcmp.ge.s32.totalorder %v1649_v7, %v405_v14  ;;  %vm409_vm12 = vcmp.lt.s32.totalorder %v1649_v7, %v408_v15  ;;  %v412_v37 = vstv %s411_s26  ;;  %v415_v38 = vstv %s414_s11  ;;  %p1914_p6 = scmp.ne.s32.totalorder %s1913_s0, 0 }
  0x86   : > { %vm486_vm6 = vmand %vm1657_vm5, %vm1653_vm4  ;;  %s1915_s12 = sld [smem:[#allocation17_spill]] (%p1914_p6) }
  0x87   : > { %v487_v12 = vsel %vm486_vm6, 1, %v1345_v11  ;;  %vm1681_vm14 = vmand %vm406_vm11, %vm409_vm12  ;;  %vm413_vm12 = vcmp.ge.s32.totalorder %v1649_v7, %v412_v37  ;;  %s1916_s2 = sld [smem:[#allocation16_spill]] (%p1914_p6) }
  0x88   : > { %v488_v13 = vperm.slane %v487_v12, 0  ;;  %vm526_vm1 = vmand %vm1681_vm14, %vm1676_vm13 }
  0x89   : > { %v527_v24 = vsel %vm526_vm1, 1, %v1345_v11  ;;  %vm1692_vm2 = vmand %vm418_vm15, %vm419_vm0  ;;  %vm416_vm15 = vcmp.lt.s32.totalorder %v1649_v7, %v415_v38 }
  0x8a   : > { %505 = vrot.lane.b32.xlu1 %v428_v1, %s1340_s13  ;;  %502 = vrot.lane.b32.xlu0 %v1633_v0, %s1340_s13  ;;  %vm489_vm8 = vcmp.eq.s32.totalorder %v488_v13, 1  ;;  %v528_v25 = vperm.slane %v527_v24, 0  ;;  %vm462_vm6 = vmand %vm1657_vm5, %vm1676_vm13 }
  0x8b   : > { %542 = vrot.lane.b32.xlu2 %v1633_v0, %s1341_s8  ;;  %v463_v33 = vsel %vm462_vm6, 1, %v1345_v11  ;;  %vm1722_vm0 = vmand %vm413_vm12, %vm416_vm15  ;;  %vm504_vm6 = vcmp.ge.s32.totalorder %v1649_v7, 1 }
  0x8c   : > { %vm529_vm3 = vcmp.eq.s32.totalorder %v528_v25, 1  ;;  %v464_v35 = vperm.slane %v463_v33, 0  ;;  %vm550_vm1 = vmand %vm1681_vm14, %vm1653_vm4  ;;  %s890_s1 = sshll.u32 (%p1914_p6), %s1915_s12, 4 }
  0x8d   : > { %v530_v27 = vsel %vm529_vm3, %v1633_v0, 0.0  ;;  %vm574_vm3 = vmand %vm1722_vm0, %vm1692_vm2  ;;  %v551_v55 = vsel %vm550_vm1, 1, %v1345_v11  ;;  %s649_s9 = sadd.s32 (%p1914_p6), %s1916_s2, %s890_s1 }
  0x8e   : > { %v532_v28 = vrot.slane %v530_v27, 1  ;;  %v533_v29 = vrot.slane %v530_v27, 2  ;;  %v534_v30 = vrot.slane %v530_v27, 3  ;;  %538 = vst [vmem:[%s1673_s6 + $0x4] sm:$0x1] %v530_v27  ;;  %vm465_vm10 = vcmp.eq.s32.totalorder %v464_v35, 1 }
  0x8f   : > { %v575_v58 = vsel %vm574_vm3, 1, %v1345_v11  ;;  %v552_v61 = vperm.slane %v551_v55, 0  ;;  %s891_s13 = sshll.u32 (%p1914_p6), %s649_s9, 3 }
  0x90   : > { %539 = vst [vmem:[%s1673_s6 + $0x14] sm:$0x1] %v532_v28  ;;  %v576_v1 = vperm.slane %v575_v58, 0 }
  0x91   : > { %540 = vst [vmem:[%s1673_s6 + $0x24] sm:$0x1] %v533_v29 }
  0x92   : > { %566 = vrot.lane.b32.xlu1 %v1633_v0, %s1342_s23  ;;  %545 = vrot.lane.b32.xlu0 %v429_v2, %s1341_s8  ;;  %541 = vst [vmem:[%s1673_s6 + $0x34] sm:$0x1] %v534_v30 }
  0x93   : > { %569 = vrot.lane.b32.xlu2 %v429_v2, %s1342_s23  ;;  %s1917_s23 = sld [smem:[#allocation28_spill]] (%p1914_p6) }
  0x9a   : > { %593 = vrot.lane.b32.xlu1 %v429_v2, %s1343_s14  ;;  %590 = vrot.lane.b32.xlu0 %v1633_v0, %s1343_s14  ;;  %s651_s14 = scalar_lea.vmem (%p1914_p6), %s1917_s23, %s891_s13 }
  0x9b   : > { %614 = vrot.lane.b32.xlu2 %v1633_v0, %s1344_s29 }
  0xa2   : > { %617 = vrot.lane.b32.xlu0 %v429_v2, %s1344_s29 }
  0xd5   : > { %v479_v10 = vpop.permute.xlu2 %478 }
  0xdd   : > { %v482_v16 = vpop.permute.xlu2 %481 }
  0xde   : > { %v485_v17 = vsel %vm480_vm7, %v479_v10, %v482_v16  ;;  %vm438_vm7 = vmand %vm1657_vm5, %vm1692_vm2 }
  0xdf   : > { %v490_v18 = vsel %vm489_vm8, %v485_v17, 0.0  ;;  %v439_v34 = vsel %vm438_vm7, 1, %v1345_v11  ;;  %vm510_vm5 = vmand %vm1681_vm14, %vm1692_vm2  ;;  %vm456_vm8 = vcmp.ge.s32.totalorder %v1649_v7, 16  ;;  %vm544_vm2 = vcmp.lt.s32.totalorder %v1649_v7, 127 }
  0xe0   : > { %v492_v19 = vrot.slane %v490_v18, 1  ;;  %v493_v20 = vrot.slane %v490_v18, 2  ;;  %v494_v21 = vrot.slane %v490_v18, 3  ;;  %498 = vst [vmem:[%s1673_s6 + $0x2] sm:$0x1] %v490_v18  ;;  %v440_v36 = vperm.slane %v439_v34, 0  ;;  %vm598_vm14 = vmand %vm1722_vm0, %vm1676_vm13 }
  0xe1   : > { %v511_v41 = vsel %vm510_vm5, 1, %v1345_v11  ;;  %vm568_vm5 = vcmp.lt.s32.totalorder %v1649_v7, 113  ;;  %v599_v5 = vsel %vm598_vm14, 1, %v1345_v11  ;;  %vm622_vm13 = vmand %vm1722_vm0, %vm1653_vm4  ;;  %vm616_vm4 = vcmp.lt.s32.totalorder %v1649_v7, 111 }
  0xe2   : > { %499 = vst [vmem:[%s1673_s6 + $0x12] sm:$0x1] %v492_v19  ;;  %vm441_vm11 = vcmp.eq.s32.totalorder %v440_v36, 1  ;;  %v512_v50 = vperm.slane %v511_v41, 0  ;;  %v600_v16 = vperm.slane %v599_v5, 0  ;;  %v623_v22 = vsel %vm622_vm13, 1, %v1345_v11 }
  0xe3   : > { %500 = vst [vmem:[%s1673_s6 + $0x22] sm:$0x1] %v493_v20  ;;  %v624_v27 = vperm.slane %v623_v22, 0 }
  0xe4   : > { %501 = vst [vmem:[%s1673_s6 + $0x32] sm:$0x1] %v494_v21  ;;  %vm513_vm7 = vcmp.eq.s32.totalorder %v512_v50, 1 }
  0xe5   : > { %v543_v52 = vpop.permute.xlu2 %542  ;;  %vm625_vm12 = vcmp.eq.s32.totalorder %v624_v27, 1 }
  0xec   : > { %v455_v31 = vpop.permute.xlu1 %454  ;;  %v431_v32 = vpop.permute.xlu0 %430 }
  0xed   : > { %v570_v2 = vpop.permute.xlu2 %569 }
  0xf4   : > { %v458_v39 = vpop.permute.xlu1 %457  ;;  %v434_v40 = vpop.permute.xlu0 %433 }
  0xf5   : > { %v461_v42 = vsel %vm456_vm8, %v455_v31, %v458_v39  ;;  %v437_v43 = vsel %vm432_vm9, %v431_v32, %v434_v40  ;;  %vm553_vm8 = vcmp.eq.s32.totalorder %v552_v61, 1  ;;  %vm577_vm9 = vcmp.eq.s32.totalorder %v576_v1, 1  ;;  %v615_v28 = vpop.permute.xlu2 %614 }
  0xf6   : > { %v466_v44 = vsel %vm465_vm10, %v461_v42, 0.0  ;;  %v442_v45 = vsel %vm441_vm11, %v437_v43, 0.0  ;;  %vm592_vm10 = vcmp.lt.s32.totalorder %v1649_v7, 112  ;;  %vm601_vm11 = vcmp.eq.s32.totalorder %v600_v16, 1 }
  0xf7   : > { %v468_v47 = vrot.slane %v466_v44, 1  ;;  %v469_v48 = vrot.slane %v466_v44, 2  ;;  %v470_v49 = vrot.slane %v466_v44, 3  ;;  %474 = vst [vmem:[%s1673_s6 + $0x1] sm:$0x1] %v466_v44  ;;  %v444_v51 = vrot.slane %v442_v45, 1 }
  0xf8   : > { %450 = vst [vmem:[%s1673_s6] sm:$0x1] %v442_v45  ;;  %v445_v53 = vrot.slane %v442_v45, 2  ;;  %v446_v54 = vrot.slane %v442_v45, 3 }
  0xf9   : > { %475 = vst [vmem:[%s1673_s6 + $0x11] sm:$0x1] %v468_v47 }
  0xfa   : > { %476 = vst [vmem:[%s1673_s6 + $0x21] sm:$0x1] %v469_v48 }
  0xfb   : > { %477 = vst [vmem:[%s1673_s6 + $0x31] sm:$0x1] %v470_v49 }
  0xfc   : > { %451 = vst [vmem:[%s1673_s6 + $0x10] sm:$0x1] %v444_v51  ;;  %v506_v56 = vpop.permute.xlu1 %505  ;;  %v503_v57 = vpop.permute.xlu0 %502 }
  0xfd   : > { %452 = vst [vmem:[%s1673_s6 + $0x20] sm:$0x1] %v445_v53  ;;  %v509_v59 = vsel %vm504_vm6, %v503_v57, %v506_v56 }
  0xfe   : > { %453 = vst [vmem:[%s1673_s6 + $0x30] sm:$0x1] %v446_v54  ;;  %v514_v60 = vsel %vm513_vm7, %v509_v59, 0.0 }
  0xff   : > { %v516_v62 = vrot.slane %v514_v60, 1  ;;  %v517_v63 = vrot.slane %v514_v60, 2  ;;  %v518_v0 = vrot.slane %v514_v60, 3  ;;  %522 = vst [vmem:[%s1673_s6 + $0x3] sm:$0x1] %v514_v60 }
 0x101   : > { %523 = vst [vmem:[%s1673_s6 + $0x13] sm:$0x1] %v516_v62 }
 0x102   : > { %524 = vst [vmem:[%s1673_s6 + $0x23] sm:$0x1] %v517_v63 }
 0x103   : > { %525 = vst [vmem:[%s1673_s6 + $0x33] sm:$0x1] %v518_v0 }
 0x104   : > { %v567_v3 = vpop.permute.xlu1 %566  ;;  %v546_v4 = vpop.permute.xlu0 %545 }
 0x105   : > { %v549_v6 = vsel %vm544_vm2, %v543_v52, %v546_v4  ;;  %v573_v9 = vsel %vm568_vm5, %v567_v3, %v570_v2 }
 0x106   : > { %v554_v10 = vsel %vm553_vm8, %v549_v6, 0.0  ;;  %v578_v12 = vsel %vm577_vm9, %v573_v9, 0.0 }
 0x107   : > { %v556_v13 = vrot.slane %v554_v10, 1  ;;  %v557_v14 = vrot.slane %v554_v10, 2  ;;  %v558_v15 = vrot.slane %v554_v10, 3  ;;  %562 = vst [vmem:[%s1673_s6 + $0x5] sm:$0x1] %v554_v10  ;;  %v580_v17 = vrot.slane %v578_v12, 1 }
 0x108   : > { %586 = vst [vmem:[%s1673_s6 + $0x6] sm:$0x1] %v578_v12  ;;  %v581_v18 = vrot.slane %v578_v12, 2  ;;  %v582_v19 = vrot.slane %v578_v12, 3 }
 0x109   : > { %563 = vst [vmem:[%s1673_s6 + $0x15] sm:$0x1] %v556_v13 }
 0x10a   : > { %564 = vst [vmem:[%s1673_s6 + $0x25] sm:$0x1] %v557_v14 }
 0x10b   : > { %565 = vst [vmem:[%s1673_s6 + $0x35] sm:$0x1] %v558_v15 }
 0x10c   : > { %587 = vst [vmem:[%s1673_s6 + $0x16] sm:$0x1] %v580_v17  ;;  %v594_v20 = vpop.permute.xlu1 %593  ;;  %v591_v21 = vpop.permute.xlu0 %590 }
 0x10d   : > { %588 = vst [vmem:[%s1673_s6 + $0x26] sm:$0x1] %v581_v18  ;;  %v597_v8 = vsel %vm592_vm10, %v591_v21, %v594_v20 }
 0x10e   : > { %589 = vst [vmem:[%s1673_s6 + $0x36] sm:$0x1] %v582_v19  ;;  %v602_v23 = vsel %vm601_vm11, %v597_v8, 0.0 }
 0x10f   : > { %v604_v24 = vrot.slane %v602_v23, 1  ;;  %v605_v25 = vrot.slane %v602_v23, 2  ;;  %v606_v26 = vrot.slane %v602_v23, 3  ;;  %610 = vst [vmem:[%s1673_s6 + $0x7] sm:$0x1] %v602_v23 }
 0x111   : > { %611 = vst [vmem:[%s1673_s6 + $0x17] sm:$0x1] %v604_v24 }
 0x112   : > { %612 = vst [vmem:[%s1673_s6 + $0x27] sm:$0x1] %v605_v25 }
 0x113   : > { %613 = vst [vmem:[%s1673_s6 + $0x37] sm:$0x1] %v606_v26 }
 0x114   : > { %v618_v11 = vpop.permute.xlu0 %617 }
 0x115   : > { %v621_v29 = vsel %vm616_vm4, %v615_v28, %v618_v11 }
 0x116   : > { %v626_v30 = vsel %vm625_vm12, %v621_v29, 0.0  ;;  %v694_v7 = vld [vmem:[%s1673_s6] sm:$0xff] (%p1914_p6) }
 0x117   : > { %v628_v31 = vrot.slane %v626_v30, 1  ;;  %v629_v32 = vrot.slane %v626_v30, 2  ;;  %v630_v33 = vrot.slane %v626_v30, 3  ;;  %634 = vst [vmem:[%s1673_s6 + $0x8] sm:$0x1] %v626_v30  ;;  %644 = sbr.rel (!%p1914_p6) target bundleno = 292 (0x124), region = 56 }
 0x118   : > { %v698_v35 = vld [vmem:[%s1673_s6 + $0x10] sm:$0xff] (%p1914_p6)  ;;  %695 = vst [vmem:[%s651_s14] sm:$0xff] (%p1914_p6), %v694_v7 }
 0x119   : > { %635 = vst [vmem:[%s1673_s6 + $0x18] sm:$0x1] %v628_v31  ;;  %v702_v37 = vld [vmem:[%s1673_s6 + $0x20] sm:$0xff] (%p1914_p6) }
 0x11a   : > { %636 = vst [vmem:[%s1673_s6 + $0x28] sm:$0x1] %v629_v32  ;;  %v706_v39 = vld [vmem:[%s1673_s6 + $0x30] sm:$0xff] (%p1914_p6) }
 0x11b   : > { %637 = vst [vmem:[%s1673_s6 + $0x38] sm:$0x1] %v630_v33 }
 0x11c   : > { %699 = vst [vmem:[%s651_s14 + $0x20] sm:$0xff] %v698_v35 }
 0x11d   : > { %703 = vst [vmem:[%s651_s14 + $0x40] sm:$0xff] %v702_v37 }
 0x11e   : > { %v696_v34 = vld [vmem:[%s1673_s6 + $0x8] sm:$0xff]  ;;  %707 = vst [vmem:[%s651_s14 + $0x60] sm:$0xff] %v706_v39 }
 0x11f   : > { %697 = vst [vmem:[%s651_s14 + $0x10] sm:$0xff] %v696_v34 }
 0x120   : > { %v700_v36 = vld [vmem:[%s1673_s6 + $0x18] sm:$0xff] }
 0x121   : > { %v704_v38 = vld [vmem:[%s1673_s6 + $0x28] sm:$0xff]  ;;  %701 = vst [vmem:[%s651_s14 + $0x30] sm:$0xff] %v700_v36 }
 0x122   : > { %v708_v40 = vld [vmem:[%s1673_s6 + $0x38] sm:$0xff]  ;;  %705 = vst [vmem:[%s651_s14 + $0x50] sm:$0xff] %v704_v38 }
 0x123   : > { %709 = vst [vmem:[%s651_s14 + $0x70] sm:$0xff] %v708_v40 }
 0x124 PF: > { %s23_s5 = sadd.s32 1, %s1335_s5   ;;  %s1919_s4 = sld [smem:[#allocation14_spill]] }
 0x125   : > { %p1795_p7 = scmp.ge.s32.totalorder %s23_s5, 6   ;;  %s1920_s23 = sld [smem:[#allocation24_spill]] }
 0x126   : > { %s1921_s7 = sld [smem:[#allocation15_spill]]  ;;  %s1926_s15 = smov %s1275_s16 }
 0x127   : > { %s1922_s26 = sld [smem:[#allocation23_spill]]  ;;  %s1927_s16 = smov %s1279_s17 }
 0x128   : > { %s1923_s27 = sld [smem:[#allocation18_spill]]  ;;  %s1929_s17 = smov %s1597_s21 }
 0x129   : > { %s1924_s6 = sld [smem:[#allocation21_spill]]  ;;  %s1930_s18 = smov %s1287_s19 }
 0x12a   : > { %s1925_s11 = sld [smem:[#allocation22_spill]]  ;;  %s1931_s19 = smov %s1291_s20 }
 0x12b   : > { %s1932_s20 = smov %s1589_s10  ;;  %s1933_s21 = smov %s1299_s22 }
 0x12c   : > { %s1934_s22 = smov %s1919_s4  ;;  %s1935_s24 = smov %s1311_s25 }
 0x12d   : > { %s1936_s25 = smov %s1921_s7  ;;  %s1937_s28 = smov %s1331_s30 }
 0x12e   :  { %22 = sbr.rel (!%p1795_p7) target bundleno = 19 (0x13), region = 151 }
 0x12f   : > { %s1938_s29 = smov %s1924_s6 }
 0x130   : > { %s1939_s30 = smov %s1925_s11 }
 0x133   :  { %725 = vsyncpa [#allocation3], 1 }
 0x134   :  { %727 = vsyncpa [#allocation3 + $0x1], 1 }
 0x135   :  { %728 = vsyncpa [#allocation5], 1 }
 0x136   :  { %730 = vsyncpa [#allocation5 + $0x1], 1 }
 0x137   :  { %731 = vsyncpa [#allocation8], 1 }
 0x138   :  { %733 = vsyncpa [#allocation8 + $0x1], 1 }

</bundles_post_ra>
